<compile_context>
chip_gen: v7x
topology: tpu7x:2x2x1
jax: 0.10.0
libtpu: 0.0.40
codegen_flags: <defaults>
</compile_context>

<pallas_src>
import jax
import jax.numpy as jnp
import numpy as np
from jax.experimental import pallas as pl
from jax.experimental.pallas import tpu as pltpu


def _round_up(x, m):
    return ((x + m - 1) // m) * m


def wide_linear_kernel(packed_ref, scale_ref, out_ref):
    # packed_ref: [P, TB]  feature-major slab, batch on the lane axis (lane-dense).
    # scale_ref : [P, 1]   per-feature-row scale (1.0 sparse/varlen, W[:,0] dense, 0.0 pad).
    # out_ref   : [1, TB]  lane-dense wide logits.
    x = packed_ref[...].astype(jnp.float32)                      # f32 accumulation (bf16 input ok)
    weighted = x * scale_ref[...]                                 # VPU multiply, lane broadcast
    out_ref[...] = jnp.sum(weighted, axis=0, keepdims=True)       # single per-lane sublane reduction


def wide_linear(packed_T, scale, *, batch_tile=None,
                target_block_bytes=2 << 20, min_grid=2):
    """packed_T: [P, B] (P multiple of 8), scale: [P, 1] f32 -> [B, 1] f32 logits."""
    P, B = packed_T.shape
    assert P % 8 == 0, "feature rows must be padded to a multiple of 8 sublanes"
    itemsize = jnp.dtype(packed_T.dtype).itemsize

    if batch_tile is None:
        # ~target_block_bytes per input block (HBM-streaming regime), lane-aligned.
        tile = max(128, (target_block_bytes // (itemsize * P)) // 128 * 128)
        # Keep >= min_grid steps so the "parallel" axis shards across v7x's two TCs.
        tile = min(tile, _round_up(pl.cdiv(B, min_grid), 128))
        # Never bigger than the lane-rounded batch.
        tile = min(tile, _round_up(B, 128))
        batch_tile = max(tile, 128)
    assert batch_tile % 128 == 0, "batch tile must be lane-aligned (multiple of 128)"

    grid_b = pl.cdiv(B, batch_tile)

    # VMEM budget: double-buffered input block + scale + output block, plus headroom.
    block_bytes = itemsize * P * batch_tile
    vmem_bytes = 2 * block_bytes + 2 * 4 * P + 2 * 4 * batch_tile
    vmem_limit = int(min(max(2 * vmem_bytes, 16 << 20), 48 << 20))  # fits v7x's smaller VMEM too

    # NOTE: no wrapper-side padding of packed_T.  The last grid step may be a remainder
    # block: out-of-bounds input lanes hold garbage, but the reduction never mixes lanes
    # and out-of-bounds output stores are masked, so valid columns are unaffected.
    out = pl.pallas_call(
        wide_linear_kernel,
        out_shape=jax.ShapeDtypeStruct((1, B), jnp.float32),
        grid=(grid_b,),
        in_specs=[
            pl.BlockSpec((P, batch_tile), lambda i: (0, i)),   # packed slab, one tile per step
            pl.BlockSpec((P, 1), lambda i: (0, 0)),            # tiny scale column, constant block
        ],
        out_specs=pl.BlockSpec((1, batch_tile), lambda i: (0, i)),  # lane-dense output
        compiler_params=pltpu.CompilerParams(
            dimension_semantics=("parallel",),
            vmem_limit_bytes=vmem_limit,
        ),
    )(packed_T, scale)

    return out[0, :][:, None]                                    # [B, 1]


def pack_wide_inputs(sparse_cat, varlen_emb_masked, dense_vals, weight,
                     *, packed_dtype=jnp.float32):
    """Wrapper-side layout plumbing: feature-major slab + per-row scale column.

    sparse_cat        : [B, n_sparse]   gathered sparse embeddings (out_dim == 1)
    varlen_emb_masked : [B, L]          gathered varlen embeddings with pad rows zeroed
    dense_vals        : [B, dense_len]  raw dense features
    weight            : [dense_len, 1]  the Linear dense weight
    """
    # Feature-major concat (rows = features, lanes = batch); pad rows to 8 sublanes.
    feats_T = jnp.concatenate(
        [sparse_cat.T, varlen_emb_masked.T, dense_vals.T], axis=0).astype(packed_dtype)  # [P_raw, B]
    P_raw = feats_T.shape[0]
    P = _round_up(P_raw, 8)
    packed_T = jnp.pad(feats_T, ((0, P - P_raw), (0, 0)))

    n_unit = sparse_cat.shape[1] + varlen_emb_masked.shape[1]    # rows that get scale 1.0
    scale = jnp.concatenate([
        jnp.ones((n_unit,), jnp.float32),
        weight[:, 0].astype(jnp.float32),
        jnp.zeros((P - P_raw,), jnp.float32),
    ])[:, None]                                                  # [P, 1]
    return packed_T, scale


if __name__ == "__main__":
    key = jax.random.PRNGKey(0)
    init_std = 1e-4
    out_dim = 1  # kernel path specialized to out_dim == 1 (the Wide logit)

    # synthetic feature_columns
    B = 1000                              # non-multiple of 128 -> exercises remainder blocks
    sparse_vocab = [10, 20, 30]           # 3 SparseFeat
    varlen_vocab, max_len = 15, 4         # 1 VarLenSparseFeat
    dense_dims = [3, 2]                   # 2 DenseFeat, dense_len = 5
    dense_len = sum(dense_dims)

    keys = jax.random.split(key, 8)
    # create_embedding_matrix: one [vocab, out_dim] table per (varlen)sparse feature, N(0, init_std)
    emb_tables = [init_std * jax.random.normal(keys[i], (v, out_dim), jnp.float32)
                  for i, v in enumerate(sparse_vocab)]
    varlen_table = init_std * jax.random.normal(keys[3], (varlen_vocab, out_dim), jnp.float32)
    # self.weight: [dense_len, out_dim], nn.init.normal_(std=init_std)
    dense_weight = init_std * jax.random.normal(keys[4], (dense_len, out_dim), jnp.float32)

    # input X columns (feature_index): sparse indices, varlen index sequence (0 == pad), dense values
    sp_idx = jnp.stack(
        [jax.random.randint(jax.random.fold_in(keys[5], i), (B,), 0, v)
         for i, v in enumerate(sparse_vocab)], axis=1)                         # [B, 3] int32
    vl_idx = jax.random.randint(keys[6], (B, max_len), 0, varlen_vocab)        # [B, 4] int32
    dense_vals = jax.random.normal(keys[7], (B, dense_len), jnp.float32)       # [B, 5] f32

    # --- glue (input_from_feature_columns): embedding gathers ---
    sparse_cat = jnp.concatenate(
        [emb_tables[i][sp_idx[:, i]] for i in range(len(sparse_vocab))], axis=-1)   # [B, 3*out_dim]
    varlen_raw = varlen_table[vl_idx][..., 0]                                       # [B, L] (out_dim == 1)
    # TODO(synk): VarLenSparseFeat combiner not shown in source; assuming masked sum-pooling (pad idx 0).
    varlen_emb_masked = jnp.where(vl_idx != 0, varlen_raw, 0.0)                     # mask fused at gather

    packed_T, scale = pack_wide_inputs(sparse_cat, varlen_emb_masked, dense_vals, dense_weight)

    out = wide_linear(packed_T, scale)          # adaptive tile: (B=1000 -> tile=512, 2 parallel steps)
    out = jax.block_until_ready(out)

    # pure-JAX reference for the same semantics
    varlen_mask = (vl_idx != 0).astype(jnp.float32)
    ref = (jnp.sum(sparse_cat, axis=-1, keepdims=True)
           + jnp.sum(varlen_raw * varlen_mask, axis=-1, keepdims=True)
           + dense_vals @ dense_weight)
    np.testing.assert_allclose(np.asarray(out), np.asarray(ref), rtol=1e-5, atol=1e-6)
    assert out.shape == (B, out_dim)
    print("KERNEL_OK")
</pallas_src>

<mosaic_0001>
module attributes {stable_mosaic.version = 11 : i64} {
  func.func @wide_linear_kernel(%arg0: i32, %arg1: memref<16x512xf32, #tpu.memory_space<vmem>>, %arg2: memref<16x1xf32, #tpu.memory_space<vmem>>, %arg3: memref<1x512xf32, #tpu.memory_space<vmem>>) attributes {dimension_semantics = [#tpu.dimension_semantics<parallel>], iteration_bounds = array<i64: 2>, scalar_prefetch = 0 : i64, scratch_operands = 0 : i64, tpu.core_type = #tpu.core_type<tc>, window_params = [{transform_indices = @transform_0, window_bounds = array<i64: 16, 512>}, {pipeline_mode = #tpu.pipeline_mode<synchronous>, transform_indices = @transform_1, window_bounds = array<i64: 16, 1>}, {transform_indices = @transform_2, window_bounds = array<i64: 1, 512>}]} {
    %c0 = arith.constant 0 : index
    %c0_0 = arith.constant 0 : index
    %0 = vector.load %arg1[%c0, %c0_0] : memref<16x512xf32, #tpu.memory_space<vmem>>, vector<16x512xf32>
    %c0_1 = arith.constant 0 : index
    %c0_2 = arith.constant 0 : index
    %1 = vector.load %arg2[%c0_1, %c0_2] : memref<16x1xf32, #tpu.memory_space<vmem>>, vector<16x1xf32>
    %2 = vector.broadcast %1 : vector<16x1xf32> to vector<16x512xf32>
    %3 = arith.mulf %0, %2 : vector<16x512xf32>
    %cst = arith.constant dense<0.000000e+00> : vector<512xf32>
    %4 = vector.multi_reduction <add>, %3, %cst [0] : vector<16x512xf32> to vector<512xf32>
    %5 = vector.shape_cast %4 : vector<512xf32> to vector<1x512xf32>
    %c0_3 = arith.constant 0 : index
    %c0_4 = arith.constant 0 : index
    %6 = vector.load %arg3[%c0_3, %c0_4] : memref<1x512xf32, #tpu.memory_space<vmem>>, vector<1x512xf32>
    tpu.vector_store %arg3[%c0_3, %c0_4], %5 {strides = array<i32>} : memref<1x512xf32, #tpu.memory_space<vmem>>, vector<1x512xf32>,
    return
  }
  func.func @transform_0(%arg0: i32) -> (i32, i32) {
    %c0_i32 = arith.constant 0 : i32
    %c0_i32_0 = arith.constant 0 : i32
    return %c0_i32, %arg0 : i32, i32
  }
  func.func @transform_1(%arg0: i32) -> (i32, i32) {
    %c0_i32 = arith.constant 0 : i32
    %c0_i32_0 = arith.constant 0 : i32
    %c0_i32_1 = arith.constant 0 : i32
    return %c0_i32, %c0_i32_0 : i32, i32
  }
  func.func @transform_2(%arg0: i32) -> (i32, i32) {
    %c0_i32 = arith.constant 0 : i32
    %c0_i32_0 = arith.constant 0 : i32
    return %c0_i32, %arg0 : i32, i32
  }
}

</mosaic_0001>

<bundles_post_ra>
// kernel: tpu_custom_call.1
= control target key start
LH: loop header
LB: loop body
LE: loop exit
PB: predicated region body
PF: predicated region fallthrough
CT: control target
= control target key end

     0   :  { %7 = vsyncpa [#allocation3], 0  ;;  %s696_s0 = inlined_call_operand.hbm [shape: f32[16,1000], index: 0, kind: input, shape index: {}]   ;;  %s697_s1 = inlined_call_operand.vmem [shape: f32[16,1], index: 1, kind: input, shape index: {}]   ;;  %s698_s2 = inlined_call_operand.hbm [shape: f32[1,1000], index: 2, kind: output, shape index: {}]  }
   0x1   :  { %9 = vsyncpa [#allocation3 + $0x1], 0 }
   0x2   :  { %10 = vsyncpa [#allocation4], 0 }
   0x3   :  { %12 = vsyncpa [#allocation4 + $0x1], 0  ;;  %s527_s9 = smov 0   ;;  %s529_s10 = smov 0  }
   0x4   :  { %s531_s11 = smov 0   ;;  %s533_s12 = smov 0  }
   0x5 LB: > { %s548_s13 = sadd.s32 4294967295, %s503_s12   ;;  %s339_s14 = sadd.s32 4294967294, %s503_s12   ;;  %s503_s12 = sphi %s533_s12, %s712_s12   ;;  %s499_s11 = sphi %s531_s11, %s711_s11   ;;  %s495_s10 = sphi %s529_s10, %s710_s10   ;;  %s491_s9 = sphi %s527_s9, %s709_s9  }
   0x6   : > { %s552_s15 = sadd.s32 1, %s503_s12   ;;  %s25_s16 = sadd.s32 1, %s499_s11 }
   0x7   : > { %s22_s17 = ssub.s32 %s503_s12, %s552_s15  ;;  %p32_p0 = scmp.ne.s32.totalorder %s499_s11, %s495_s10 }
   0x8   : > { %p23_p1 = scmp.eq.s32.totalorder %s22_s17, 0  ;;  %p33_p2 = scmp.eq.s32.totalorder %s503_s12, 0 }
   0x9   : > { %p38_p3 = scmp.ne.s32.totalorder %s495_s10, %s491_s9  ;;  %p39_p4 = scmp.eq.s32.totalorder %s548_s13, 0 }
   0xa   : > { %s564_s18 = scalar_select %p23_p1, %s499_s11, %s25_s16  }
   0xb   : > { %p566_p5 = por %p33_p2, %p32_p0  ;;  %p570_p6 = por %p39_p4, %p38_p3 }
   0xc   : > { %p83_p7 = scmp.eq.s32.totalorder %s548_s13, 1  ;;  %p89_p8 = scmp.eq.s32.totalorder %s339_s14, 1 }
   0xd   : > { %p367_p10 = scmp.lt.s32.totalorder %s503_s12, 2  ;;  %s112_s23 = sand.u32 1, %s499_s11  }
   0xe   : > { %p577_p11 = por %p83_p7, %p32_p0  ;;  %p581_p12 = por %p89_p8, %p38_p3 }
   0xf   : > { %s353_s24 = sshll.u32 %s503_s12, 9  ;;  %s342_s25 = sshll.u32 %s112_s23, 6 }
  0x10   : > { %s702_s21 = scalar_select %p577_p11, 1, 0 }
  0x11   : > { %s703_s22 = scalar_select %p581_p12, 1, 0 }
  0x12   : > { %s590_s28 = scalar_lea.hbm %s696_s0, %s353_s24  ;;  %s116_s29 = scalar_lea.vmem [#allocation2], %s342_s25 }
  0x13   : > { %s123_s30 = sshll.u32 %s116_s29, 4  ;;  %p594_p13 = pnand %p367_p10, %p566_p5  ;;  %s598_s30 = int_to_ptr.vmem [resolvable:$true] %s123_s30 }
  0x14   : > { %s601_s4 = scalar_lea.sflag [#allocation3], %s112_s23  ;;  %s407_s5 = scalar_lea.hbm %s590_s28, 1024 }
  0x15   : > { %p408_p1 = scmp.ne.s32.totalorder %s590_s28, %s407_s5  ;;  %p409_p2 = pneg %p594_p13 }
  0x16   : > { %s412_s8 = scalar_lea.hbm %s696_s0, 2048  ;;  %p413_p5 = scmp.lt.u32.totalorder %s590_s28, %s696_s0 }
  0x17   : > { %p410_p3 = pnand %p409_p2, %p408_p1  ;;  %p414_p7 = scmp.lt.u32.totalorder %s412_s8, %s407_s5 }
  0x18   : > { %p416_p10 = scmp.lt.u32.totalorder %s407_s5, %s590_s28 }
  0x19   : > { %p411_p4 = pneg %p410_p3  ;;  %p415_p8 = por %p414_p7, %p413_p5 }
  0x1b   : > { %p417_p9 = por %p416_p10, %p415_p8 }
  0x1d   : > { %p418_p0 = pnand %p417_p9, %p411_p4 }
  0x1f   : > { %421 = shalt.err (!%p418_p0)
}
  0x20   : > { %s422_s17 = scalar_lea.vmem %s598_s30, 1024  ;;  %s505_s19 = smov [#allocation2]  }
  0x21   : > { %p423_p1 = scmp.ne.s32.totalorder %s598_s30, %s422_s17  ;;  %s427_s23 = sshll.u32 %s505_s19, 4  ;;  %s428_s23 = int_to_ptr.vmem [resolvable:$false] %s427_s23 }
  0x22   : > { %s429_s24 = scalar_lea.vmem %s428_s23, 2048  ;;  %p430_p11 = scmp.lt.s32.totalorder %s598_s30, %s428_s23 }
  0x23   : > { %p425_p3 = pnand %p423_p1, %p409_p2  ;;  %p431_p5 = scmp.lt.s32.totalorder %s429_s24, %s422_s17 }
  0x25   : > { %p426_p12 = pneg %p425_p3  ;;  %p432_p7 = por %p431_p5, %p430_p11 }
  0x27   : > { %p433_p8 = pnand %p432_p7, %p426_p12 }
  0x29   : > { %436 = shalt.err (!%p433_p8)
}
  0x2a   : > { %s506_s25 = smov 1024   ;;  %s507_s26 = smov 512  }
  0x2b   : > { %s508_s27 = smov 32   ;;  %p131_p9 = scmp.lt.s32.totalorder %s503_s12, 3 }
  0x2c   : > { %362 = dma.hbm_to_vmem [thread:$0]  (!%p594_p13), %s590_s28, 1024, %s598_s30, %s601_s4, %s506_s25, %s507_s26, %s508_s27  }
  0x2d   : > { %p705_p0 = scmp.ge.s32.totalorder %s503_s12, 1 }
  0x2f   : > { %p132_p2 = pnand %p705_p0, %p131_p9 }
  0x30   : > { %s633_s29 = sand.u32 (!%p132_p2), 1, %s495_s10  }
  0x31   : > { %135 = sbr.rel (%p132_p2) target bundleno = 229 (0xe5), region = 28  ;;  %s346_s5 = sshll.u32 (!%p132_p2), %s633_s29, 6 }
  0x32   : > { %s138_s6 = scalar_lea.sflag (!%p132_p2), [#allocation3], %s633_s29  ;;  %s141_s7 = scalar_lea.vmem (!%p132_p2), [#allocation2], %s346_s5 }
  0x38   : > { %482 = dma.done.wait (%p570_p6), %s138_s6, 1024  }
  0x39   : > { %484 = vsyncadd (%p570_p6), %s138_s6, 4294966272  ;;  %v509_v0 = vmov 0   ;;  %v172_v1 = vld [vmem:[%s697_s1] sm:$0xff]  ;;  %v173_v2 = vld [vmem:[%s697_s1 + $0x8] sm:$0xff]  ;;  %v510_v29 = vmov 1966171168   ;;  %v229_v31 = vlaneseq }
  0x3a   : > { %406 = vset.pattern.permute.xlu0 %v509_v0  ;;  %v164_v4 = vld [vmem:[%s141_s7] sm:$0xff]  ;;  %v165_v5 = vld [vmem:[%s141_s7 + $0x8] sm:$0xff]  ;;  %v166_v6 = vld [vmem:[%s141_s7 + $0x10] sm:$0xff]  ;;  %v227_v30 = vunpack.c.l.s4 %v510_v29  ;;  %s347_s20 = sshll.u32 %s633_s29, 2  ;;  %s354_s8 = sshll.u32 %s548_s13, 6 }
  0x3b   : > { %176 = vperm.xlu0 %406, %v172_v1   ;;  %v167_v7 = vld [vmem:[%s141_s7 + $0x18] sm:$0xff]  ;;  %v168_v8 = vld [vmem:[%s141_s7 + $0x20] sm:$0xff]  ;;  %v169_v9 = vld [vmem:[%s141_s7 + $0x28] sm:$0xff]  ;;  %v230_v41 = vshrl.u32 %v229_v31, 7  ;;  %s161_s14 = scalar_lea.vmem [#allocation5], %s347_s20  ;;  %vm251_vm0 = vcmp.lt.s32.totalorder %v229_v31, 512  ;;  %s652_s23 = scalar_lea.hbm %s698_s2, %s354_s8 }
  0x3c   : > { %v170_v10 = vld [vmem:[%s141_s7 + $0x30] sm:$0xff]  ;;  %v171_v11 = vld [vmem:[%s141_s7 + $0x38] sm:$0xff]  ;;  %v228_v40 = vunpack.c.0.s8 %v227_v30  ;;  %s269_s16 = sshll.u32 %s161_s14, 4  ;;  %s255_s24 = scalar_lea.sflag [#allocation4], %s633_s29  ;;  %s654_s16 = int_to_ptr.vmem [resolvable:$true] %s269_s16 }
  0x3d   : > { %s437_s25 = scalar_lea.vmem %s654_s16, 64  ;;  %p706_p11 = scmp.ne.s32.totalorder %s702_s21, 0 }
  0x3e   : > { %v231_v50 = vsub.s32 %v228_v40, %v230_v41  ;;  %p438_p6 = scmp.ne.s32.totalorder %s654_s16, %s437_s25  ;;  %s511_s13 = smov [#allocation5]  }
  0x3f   : > { %181 = vperm.xlu0 %406, %v173_v2   ;;  %s441_s26 = sshll.u32 %s511_s13, 4  ;;  %s442_s26 = int_to_ptr.vmem [resolvable:$false] %s441_s26 }
  0x40   : > { %p439_p12 = pnand %p438_p6, %p706_p11  ;;  %s443_s27 = scalar_lea.vmem %s442_s26, 128 }
  0x41   : > { %p444_p4 = scmp.lt.s32.totalorder %s654_s16, %s442_s26  ;;  %p445_p10 = scmp.lt.s32.totalorder %s443_s27, %s437_s25 }
  0x42   : > { %p440_p13 = pneg %p439_p12 }
  0x43   : > { %p446_p1 = por %p445_p10, %p444_p4 }
  0x45   : > { %p447_p3 = pnand %p446_p1, %p440_p13 }
  0xba   : > { %v177_v3 = vpop.permute.xlu0 %176 }
  0xbb   : > { %v184_v12 = vmul.f32 %v177_v3, %v164_v4  ;;  %v185_v13 = vmul.f32 %v177_v3, %v165_v5  ;;  %v186_v14 = vmul.f32 %v177_v3, %v166_v6  ;;  %v187_v15 = vmul.f32 %v177_v3, %v167_v7 }
  0xbe   : > { %v182_v16 = vpop.permute.xlu0 %181 }
  0xbf   : > { %v188_v17 = vmul.f32 %v182_v16, %v168_v8  ;;  %v189_v18 = vmul.f32 %v182_v16, %v169_v9  ;;  %v190_v19 = vmul.f32 %v182_v16, %v170_v10  ;;  %v191_v20 = vmul.f32 %v182_v16, %v171_v11 }
  0xc1   : > { %v192_v21 = vadd.f32 %v188_v17, %v184_v12  ;;  %v199_v22 = vadd.f32 %v189_v18, %v185_v13  ;;  %v206_v23 = vadd.f32 %v190_v19, %v186_v14  ;;  %v213_v24 = vadd.f32 %v191_v20, %v187_v15 }
  0xc3   : > { %v193_v25 = vrot.slane %v192_v21, 4  ;;  %v200_v26 = vrot.slane %v199_v22, 4  ;;  %v207_v27 = vrot.slane %v206_v23, 4  ;;  %v214_v28 = vrot.slane %v213_v24, 4 }
  0xc5   : > { %v194_v32 = vadd.f32 %v193_v25, %v192_v21  ;;  %v201_v33 = vadd.f32 %v200_v26, %v199_v22  ;;  %v208_v34 = vadd.f32 %v207_v27, %v206_v23  ;;  %v215_v35 = vadd.f32 %v214_v28, %v213_v24 }
  0xc7   : > { %v195_v36 = vrot.slane %v194_v32, 2  ;;  %v202_v37 = vrot.slane %v201_v33, 2  ;;  %v209_v38 = vrot.slane %v208_v34, 2  ;;  %v216_v39 = vrot.slane %v215_v35, 2 }
  0xc9   : > { %v196_v42 = vadd.f32 %v195_v36, %v194_v32  ;;  %v203_v43 = vadd.f32 %v202_v37, %v201_v33  ;;  %v210_v44 = vadd.f32 %v209_v38, %v208_v34  ;;  %v217_v45 = vadd.f32 %v216_v39, %v215_v35 }
  0xcb   : > { %v197_v46 = vrot.slane %v196_v42, 1  ;;  %v204_v47 = vrot.slane %v203_v43, 1  ;;  %v211_v48 = vrot.slane %v210_v44, 1  ;;  %v218_v49 = vrot.slane %v217_v45, 1 }
  0xcd   : > { %v198_v51 = vadd.f32 %v197_v46, %v196_v42  ;;  %v205_v52 = vadd.f32 %v204_v47, %v203_v43  ;;  %v212_v53 = vadd.f32 %v211_v48, %v210_v44  ;;  %v219_v54 = vadd.f32 %v218_v49, %v217_v45 }
  0xcf   : > { %v224_v55 = vcombine.low %v198_v51, %v205_v52  ;;  %v225_v56 = vcombine.low %v212_v53, %v219_v54 }
  0xd1   : > { %v232_v57 = vrot.slane %v224_v55, %v231_v50  ;;  %v239_v58 = vrot.slane %v225_v56, %v231_v50 }
  0xd3   : > { %v240_v59 = vcombine.low %v232_v57, %v239_v58 }
  0xd5   : > { %v247_v60 = vrot.slane %v240_v59, %v231_v50 }
  0xd7   : > { %253 = vst.msk [vmem:[%s161_s14] sm:$0xf] %vm251_vm0, %v247_v60 }
  0xd8   : > { %450 = shalt.err (!%p447_p3)
}
  0xd9   : > { %s451_s29 = scalar_lea.hbm %s652_s23, 64  ;;  %s455_s7 = scalar_lea.hbm %s698_s2, 128 }
  0xda   : > { %p452_p5 = scmp.ne.s32.totalorder %s652_s23, %s451_s29  ;;  %p456_p9 = scmp.lt.u32.totalorder %s652_s23, %s698_s2 }
  0xdb   : > { %p457_p0 = scmp.lt.u32.totalorder %s455_s7, %s451_s29  ;;  %p459_p6 = scmp.lt.u32.totalorder %s451_s29, %s652_s23 }
  0xdc   : > { %p453_p7 = pnand %p452_p5, %p706_p11 }
  0xdd   : > { %p458_p2 = por %p457_p0, %p456_p9 }
  0xde   : > { %p454_p8 = pneg %p453_p7 }
  0xdf   : > { %p460_p12 = por %p459_p6, %p458_p2 }
  0xe1   : > { %p461_p13 = pnand %p460_p12, %p454_p8 }
  0xe3   : > { %464 = shalt.err (!%p461_p13)
}
  0xe4   : > { %357 = dma.vmem_to_hbm [thread:$0]  (%p706_p11), %s654_s16, 64, %s652_s23, %s255_s24  }
  0xe5 PF: > { %s281_s3 = sand.u32 1, %s491_s9   ;;  %p707_p4 = scmp.ne.s32.totalorder %s703_s22, 0 }
  0xe6   : > { %p708_p10 = scmp.ge.s32.totalorder %s503_s12, 2  ;;  %s282_s4 = scalar_lea.sflag [#allocation4], %s281_s3 }
  0xe8   : > { %p364_p1 = pnand %p708_p10, %p707_p4 }
  0xea   : > { %486 = dma.done.wait (!%p364_p1), %s282_s4, 64  }
  0xeb   : > { %488 = vsyncadd (!%p364_p1), %s282_s4, 4294967232  ;;  %p15_p3 = scmp.ge.s32.totalorder %s552_s15, 4   ;;  %s709_s9 = smov %s495_s10 }
  0xec   : > { %s710_s10 = smov %s499_s11  ;;  %s711_s11 = smov %s564_s18 }
  0xed   : > { %s712_s12 = smov %s552_s15  ;;  %17 = sbr.rel (!%p15_p3) target bundleno = 5 (0x5), region = 73 }
  0xf4   :  { %287 = vsyncpa [#allocation3], 1 }
  0xf5   :  { %289 = vsyncpa [#allocation3 + $0x1], 1 }
  0xf6   :  { %290 = vsyncpa [#allocation4], 1 }
  0xf7   :  { %292 = vsyncpa [#allocation4 + $0x1], 1 }

</bundles_post_ra>
